<compile_context>
chip_gen: v5e
topology: v5e:2x2
jax: 0.10.0
libtpu: 0.0.40
codegen_flags: <defaults>
</compile_context>

<pallas_src>
import functools

import jax
import jax.numpy as jnp
from jax import lax
from jax.experimental import pallas as pl
from jax.experimental.pallas import tpu as pltpu


# ----------------------------------------------------------------------------- helpers


def _round_up(x, m):
    return -(-x // m) * m


def _sublane_pack(dtype):
    itemsize = jnp.dtype(dtype).itemsize
    return {1: 32, 2: 16}.get(itemsize, 8)


def _vmem_capacity_bytes():
    try:
        return int(pltpu.get_tpu_info().vmem_capacity_bytes)
    except Exception:
        return 64 << 20  # conservative default: v7x per-TensorCore VMEM


def _choose_tile_rows(batch, feat, dtype, target_tile_bytes, min_steps=8):
    """Lane-dense tile height: MiB-scale, sublane-packed, >= min_steps grid steps."""
    pack = _sublane_pack(dtype)
    # Budget in f32 terms so the f32 norm temporary is covered for bf16 inputs.
    bytes_per_row = max(feat, 1) * 4
    rows = (target_tile_bytes // bytes_per_row) // pack * pack
    rows = max(rows, pack)
    rows = min(rows, _round_up(batch, pack))
    # Aim for >= min_steps steps so each TensorCore (v7x has two) gets several
    # software-pipelined steps; never shrink below one sublane pack.
    while rows > pack and pl.cdiv(batch, rows) < min_steps:
        rows = max(pack, ((rows // 2) // pack) * pack)
    return rows


# ----------------------------------------------------------------------------- kernels


def _l2ball_kernel(x_ref, out_ref, *, radius):
    """Single-pass kernel: one (tile_rows, D) tile, whole row norm in VMEM."""
    x = x_ref[...]
    xf = x.astype(jnp.float32)

    # Row-wise squared L2 norm: lane-axis reduction -> XLU slot.
    sq = jnp.sum(xf * xf, axis=-1, keepdims=True)

    # Compare squared quantities; rsqrt runs on the EUP (otherwise-idle slot).
    # NOTE: keep the jnp.where select — radius*rsqrt(0)=inf sits safely in the
    # unselected branch for all-zero rows; do not turn this into blending.
    scale = jnp.where(sq > radius * radius, radius * lax.rsqrt(sq), 1.0)

    # Apply the scale in f32 and cast once (no double rounding for bf16).
    out_ref[...] = (xf * scale).astype(out_ref.dtype)


def _l2ball_kernel_dtiled(x_ref, out_ref, sq_ref, *, radius, nd, tile_d, feat):
    """Large-D fallback: two passes over D-tiles per row-tile.

    Grid axis 1 has length 2*nd: k in [0, nd) accumulates the squared norm
    into a per-row VMEM scratch, k in [nd, 2*nd) re-reads the same tiles and
    writes the scaled output (~1.5x HBM traffic vs the single-pass kernel).
    """
    k = pl.program_id(1)

    @pl.when(k == 0)
    def _zero():
        sq_ref[...] = jnp.zeros_like(sq_ref)

    xf = x_ref[...].astype(jnp.float32)

    @pl.when(k < nd)
    def _accumulate():
        v = xf
        if feat % tile_d != 0:
            # Ragged last D-tile: mask out-of-bounds columns (garbage reads)
            # so they don't contaminate valid rows' norms.
            col = lax.broadcasted_iota(jnp.int32, v.shape, 1) + k * tile_d
            v = jnp.where(col < feat, v, 0.0)
        sq_ref[...] += jnp.sum(v * v, axis=-1, keepdims=True)

    @pl.when(k >= nd)
    def _write():
        sq = sq_ref[...]
        scale = jnp.where(sq > radius * radius, radius * lax.rsqrt(sq), 1.0)
        out_ref[...] = (xf * scale).astype(out_ref.dtype)


# ----------------------------------------------------------------------------- wrapper


def euclidean_projection_l2ball(x, radius=1.0, *, target_tile_bytes=None,
                                donate_input=False):
    """Projects each row of x (shape (B, D)) onto the L2 ball of given radius."""
    radius = float(radius)
    assert radius >= 0.0, "L2-ball radius must be non-negative"
    B, D = x.shape
    pack = _sublane_pack(x.dtype)

    if target_tile_bytes is None:
        # Generation-aware budget: the HBM roofline already saturates at ~1-4 MiB
        # tiles, so keep tiles small on 64 MiB-VMEM parts (v7x) and modest elsewhere.
        small_vmem = _vmem_capacity_bytes() <= (64 << 20)
        target_tile_bytes = (2 << 20) if small_vmem else (4 << 20)

    # Lane-dense layout: pad the feature axis to a multiple of 128 (zero columns
    # don't change a row's norm). Only triggers for small/odd D; batch is never
    # padded (the ragged last row-block is handled by Pallas masking).
    D_pad = _round_up(D, 128)
    x_in = x if D_pad == D else jnp.pad(x, ((0, 0), (0, D_pad - D)))

    # Fallback to the D-tiled two-pass kernel only when even a minimum-height
    # (pack, D_pad) tile blows the per-tile budget.
    d_tiled = pack * D_pad * 4 > target_tile_bytes

    if not d_tiled:
        tile_rows = _choose_tile_rows(B, D_pad, x.dtype, target_tile_bytes)
        grid = (pl.cdiv(B, tile_rows),)
        out = pl.pallas_call(
            functools.partial(_l2ball_kernel, radius=radius),
            out_shape=jax.ShapeDtypeStruct((B, D_pad), x.dtype),
            grid=grid,
            in_specs=[pl.BlockSpec((tile_rows, D_pad), lambda i: (i, 0))],
            out_specs=pl.BlockSpec((tile_rows, D_pad), lambda i: (i, 0)),
            input_output_aliases=(
                {0: 0} if (donate_input and D_pad == D) else {}),
            compiler_params=pltpu.CompilerParams(
                dimension_semantics=("parallel",),
                # 2x(in) + 2x(out) tiles + f32 temporaries stay well under 32 MiB
                # with a <=4 MiB tile budget; fits scoped VMEM on v5e/v6e/v7x.
                vmem_limit_bytes=32 << 20,
            ),
        )(x_in)
    else:
        # ---- large-D path: tile over D with a per-row sq-norm accumulator ----
        tile_d = max(128, min(D_pad,
                              (target_tile_bytes // (pack * 4)) // 128 * 128))
        tile_rows = max(pack,
                        ((target_tile_bytes // (tile_d * 4)) // pack) * pack)
        tile_rows = min(tile_rows, _round_up(B, pack))
        nd = pl.cdiv(D_pad, tile_d)
        grid = (pl.cdiv(B, tile_rows), 2 * nd)

        out = pl.pallas_call(
            functools.partial(_l2ball_kernel_dtiled, radius=radius, nd=nd,
                              tile_d=tile_d, feat=D_pad),
            out_shape=jax.ShapeDtypeStruct((B, D_pad), x.dtype),
            grid=grid,
            in_specs=[pl.BlockSpec(
                (tile_rows, tile_d),
                lambda i, k: (i, jnp.where(k < nd, k, k - nd)))],
            # Output block index stays at (i, 0) for the whole first pass (no
            # writes there), then advances with the second pass where it is
            # written exactly once per D-tile.
            out_specs=pl.BlockSpec(
                (tile_rows, tile_d),
                lambda i, k: (i, jnp.where(k < nd, 0, k - nd))),
            scratch_shapes=[pltpu.VMEM((tile_rows, 1), jnp.float32)],
            compiler_params=pltpu.CompilerParams(
                dimension_semantics=("parallel", "arbitrary"),
                vmem_limit_bytes=32 << 20,
            ),
        )(x_in)

    return out if D_pad == D else out[:, :D]


# ----------------------------------------------------------------------------- reference / test


def _reference(x, radius):
    xf = x.astype(jnp.float32)
    norm = jnp.linalg.norm(xf, axis=-1, keepdims=True)
    is_outside = norm > radius
    scaled = (radius * xf / norm).astype(x.dtype)
    return jnp.where(is_outside, scaled, x)


if __name__ == "__main__":
    radius = 1.0

    # Case 1: main streaming path, ragged batch (B not a multiple of the tile).
    B, D = 10, 128
    x = jax.random.normal(jax.random.PRNGKey(0), (B, D), dtype=jnp.float32)
    x = x * jnp.linspace(0.02, 0.3, B, dtype=jnp.float32)[:, None]  # mixed in/out
    out = jax.block_until_ready(euclidean_projection_l2ball(x, radius))
    assert out.shape == x.shape and out.dtype == x.dtype
    assert jnp.allclose(out, _reference(x, radius), atol=1e-5, rtol=1e-5)

    # Case 2: feature dim not a multiple of 128 (lane-padding path).
    B2, D2 = 9, 100
    x2 = jax.random.normal(jax.random.PRNGKey(1), (B2, D2), dtype=jnp.float32)
    x2 = x2 * jnp.linspace(0.02, 0.3, B2, dtype=jnp.float32)[:, None]
    out2 = jax.block_until_ready(euclidean_projection_l2ball(x2, radius))
    assert out2.shape == x2.shape and out2.dtype == x2.dtype
    assert jnp.allclose(out2, _reference(x2, radius), atol=1e-5, rtol=1e-5)

    # Case 3: force the large-D two-pass (D-tiled) path with a tiny tile budget
    # (also exercises the ragged D-tile column mask and ragged row tile).
    B3, D3 = 12, 384
    x3 = jax.random.normal(jax.random.PRNGKey(2), (B3, D3), dtype=jnp.float32)
    x3 = x3 * jnp.linspace(0.02, 0.12, B3, dtype=jnp.float32)[:, None]
    out3 = jax.block_until_ready(
        euclidean_projection_l2ball(x3, radius, target_tile_bytes=8 * 256 * 4))
    assert out3.shape == x3.shape and out3.dtype == x3.dtype
    assert jnp.allclose(out3, _reference(x3, radius), atol=1e-5, rtol=1e-5)

    print("KERNEL_OK")
</pallas_src>

<mosaic_0001>
module attributes {stable_mosaic.version = 11 : i64} {
  func.func @_l2ball_kernel(%arg0: i32, %arg1: memref<8x128xf32, #tpu.memory_space<vmem>>, %arg2: memref<8x128xf32, #tpu.memory_space<vmem>>) attributes {dimension_semantics = [#tpu.dimension_semantics<parallel>], iteration_bounds = array<i64: 2>, scalar_prefetch = 0 : i64, scratch_operands = 0 : i64, tpu.core_type = #tpu.core_type<tc>, window_params = [{transform_indices = @transform_0, window_bounds = array<i64: 8, 128>}, {transform_indices = @transform_1, window_bounds = array<i64: 8, 128>}]} {
    %c0 = arith.constant 0 : index
    %c0_0 = arith.constant 0 : index
    %0 = vector.load %arg1[%c0, %c0_0] : memref<8x128xf32, #tpu.memory_space<vmem>>, vector<8x128xf32>
    %1 = arith.mulf %0, %0 : vector<8x128xf32>
    %cst = arith.constant dense<0.000000e+00> : vector<8xf32>
    %2 = vector.multi_reduction <add>, %1, %cst [1] : vector<8x128xf32> to vector<8xf32>
    %3 = vector.shape_cast %2 : vector<8xf32> to vector<8x1xf32>
    %cst_1 = arith.constant 1.000000e+00 : f32
    %4 = vector.broadcast %cst_1 : f32 to vector<8x1xf32>
    %5 = arith.cmpf ogt, %3, %4 : vector<8x1xf32>
    %6 = math.rsqrt %3 : vector<8x1xf32>
    %cst_2 = arith.constant 1.000000e+00 : f32
    %7 = vector.broadcast %cst_2 : f32 to vector<8x1xf32>
    %8 = arith.mulf %7, %6 : vector<8x1xf32>
    %cst_3 = arith.constant 1.000000e+00 : f32
    %9 = vector.broadcast %cst_3 : f32 to vector<8x1xf32>
    %10 = arith.select %5, %8, %9 : vector<8x1xi1>, vector<8x1xf32>
    %11 = vector.broadcast %10 : vector<8x1xf32> to vector<8x128xf32>
    %12 = arith.mulf %0, %11 : vector<8x128xf32>
    %c0_4 = arith.constant 0 : index
    %c0_5 = arith.constant 0 : index
    %13 = vector.load %arg2[%c0_4, %c0_5] : memref<8x128xf32, #tpu.memory_space<vmem>>, vector<8x128xf32>
    tpu.vector_store %arg2[%c0_4, %c0_5], %12 {strides = array<i32>} : memref<8x128xf32, #tpu.memory_space<vmem>>, vector<8x128xf32>,
    return
  }
  func.func @transform_0(%arg0: i32) -> (i32, i32) {
    %c0_i32 = arith.constant 0 : i32
    %c0_i32_0 = arith.constant 0 : i32
    return %arg0, %c0_i32 : i32, i32
  }
  func.func @transform_1(%arg0: i32) -> (i32, i32) {
    %c0_i32 = arith.constant 0 : i32
    %c0_i32_0 = arith.constant 0 : i32
    return %arg0, %c0_i32 : i32, i32
  }
}

</mosaic_0001>

<bundles_post_ra>
// kernel: tpu_custom_call.1
= control target key start
LH: loop header
LB: loop body
LE: loop exit
PB: predicated region body
PF: predicated region fallthrough
CT: control target
= control target key end

     0   :  { %6 = vsyncpa [#allocation3], 0  ;;  %s533_s0 = inlined_call_operand.hbm [shape: f32[10,128], index: 0, kind: input, shape index: {}]   ;;  %s534_s1 = inlined_call_operand.hbm [shape: f32[10,128], index: 1, kind: output, shape index: {}]  }
   0x1   :  { %8 = vsyncpa [#allocation3 + $0x1], 0 }
   0x2   :  { %9 = vsyncpa [#allocation4], 0 }
   0x3   :  { %11 = vsyncpa [#allocation4 + $0x1], 0  ;;  %s406_s6 = smov 0   ;;  %s408_s7 = smov 0  }
   0x4   :  { %s410_s8 = smov 0   ;;  %s412_s9 = smov 0  }
   0x5 LB: > { %s427_s10 = sadd.s32 4294967295, %s394_s9   ;;  %s238_s11 = sadd.s32 4294967294, %s394_s9   ;;  %s394_s9 = sphi %s412_s9, %s544_s9   ;;  %s390_s8 = sphi %s410_s8, %s543_s8   ;;  %s386_s7 = sphi %s408_s7, %s542_s7   ;;  %s382_s6 = sphi %s406_s6, %s541_s6  }
   0x6   : > { %s431_s12 = sadd.s32 1, %s394_s9   ;;  %s24_s13 = sadd.s32 1, %s390_s8 }
   0x7   : > { %s21_s14 = ssub.s32 %s394_s9, %s431_s12  ;;  %p31_p0 = scmp.ne.s32.totalorder %s390_s8, %s386_s7 }
   0x8   : > { %p22_p1 = scmp.eq.s32.totalorder %s21_s14, 0  ;;  %p32_p2 = scmp.eq.s32.totalorder %s394_s9, 0 }
   0x9   : > { %p37_p3 = scmp.ne.s32.totalorder %s386_s7, %s382_s6  ;;  %p38_p4 = scmp.eq.s32.totalorder %s427_s10, 0 }
   0xa   : > { %s443_s15 = scalar_select %p22_p1, %s390_s8, %s24_s13  }
   0xb   : > { %p445_p5 = por %p32_p2, %p31_p0  ;;  %p449_p6 = por %p38_p4, %p37_p3 }
   0xc   : > { %p61_p7 = scmp.eq.s32.totalorder %s427_s10, 1  ;;  %p67_p8 = scmp.eq.s32.totalorder %s238_s11, 1 }
   0xd   : > { %p262_p10 = scmp.lt.s32.totalorder %s394_s9, 2  ;;  %s87_s20 = sand.u32 1, %s390_s8  }
   0xe   : > { %p456_p11 = por %p61_p7, %p31_p0  ;;  %p460_p12 = por %p67_p8, %p37_p3 }
   0xf   : > { %s242_s21 = sshll.u32 %s394_s9, 3  ;;  %s241_s22 = sshll.u32 %s87_s20, 3 }
  0x10   : > { %s95_s25 = scalar_lea.hbm %s533_s0, %s242_s21  ;;  %s91_s27 = scalar_lea.vmem [#allocation2], %s241_s22 }
  0x11   : > { %s97_s26 = sshll.u32 %s95_s25, 4  ;;  %s99_s28 = sshll.u32 %s91_s27, 4  ;;  %s98_s26 = int_to_ptr.hbm [resolvable:$true] %s97_s26  ;;  %s100_s28 = int_to_ptr.vmem [resolvable:$true] %s99_s28 }
  0x12   : > { %p471_p13 = pnand %p262_p10, %p445_p5  ;;  %p243_p0 = scmp.ge.s32.totalorder %s394_s9, 1 }
  0x13   : > { %p104_p1 = scmp.lt.s32.totalorder %s394_s9, 3  ;;  %s88_s30 = scalar_lea.sflag [#allocation3], %s87_s20 }
  0x14   : > { %s298_s2 = sshra.s32 %s98_s26, 4  ;;  %p302_p3 = pneg %p471_p13  ;;  %s299_s2 = int_to_ptr.hbm [resolvable:$true] %s298_s2 }
  0x15   : > { %s300_s3 = scalar_lea.hbm %s299_s2, 8  ;;  %s305_s11 = scalar_lea.hbm %s533_s0, 16 }
  0x16   : > { %p301_p2 = scmp.ne.s32.totalorder %s299_s2, %s300_s3  ;;  %p306_p5 = scmp.lt.s32.totalorder %s299_s2, %s533_s0 }
  0x17   : > { %p307_p8 = scmp.lt.s32.totalorder %s305_s11, %s300_s3 }
  0x18   : > { %p303_p4 = pnand %p302_p3, %p301_p2 }
  0x19   : > { %p308_p10 = por %p307_p8, %p306_p5 }
  0x1a   : > { %p304_p7 = pneg %p303_p4 }
  0x1c   : > { %p309_p9 = pnand %p308_p10, %p304_p7 }
  0x1e   : > { %312 = shalt.err (!%p309_p9)
}
  0x1f   : > { %257 = dma.hbm_to_vmem [thread:$0]  (!%p471_p13), %s98_s26, 128, %s100_s28, %s88_s30  }
  0x20   : > { %p105_p2 = pnand %p243_p0, %p104_p1 }
  0x21   : > { %s492_s16 = sand.u32 (!%p105_p2), 1, %s386_s7  }
  0x22   : > { %108 = sbr.rel (%p105_p2) target bundleno = 183 (0xb7), region = 24  ;;  %s244_s20 = sshll.u32 (!%p105_p2), %s492_s16, 3 }
  0x23   : > { %s111_s21 = scalar_lea.sflag (!%p105_p2), [#allocation3], %s492_s16  ;;  %s114_s22 = scalar_lea.vmem (!%p105_p2), [#allocation2], %s244_s20 }
  0x27   : > { %373 = dma.done.wait (%p449_p6), %s111_s21, 128  }
  0x28   : > { %375 = vsyncadd (%p449_p6), %s111_s21, 4294967168  ;;  %v134_v0 = vld [vmem:[%s114_s22] sm:$0xff]  ;;  %s247_s23 = sshll.u32 %s427_s10, 3  ;;  %s133_s17 = scalar_lea.vmem [#allocation5], %s244_s20 }
  0x29   : > { %v135_v1 = vmul.f32 %v134_v0, %v134_v0  ;;  %s163_s26 = scalar_lea.hbm %s534_s1, %s247_s23  ;;  %s165_s27 = sshll.u32 %s133_s17, 4  ;;  %s166_s27 = int_to_ptr.vmem [resolvable:$true] %s165_s27 }
  0x2a   : > { %s167_s28 = sshll.u32 %s163_s26, 4  ;;  %s153_s10 = scalar_lea.sflag [#allocation4], %s492_s16  ;;  %s168_s28 = int_to_ptr.hbm [resolvable:$true] %s167_s28 }
  0x2b   : > { %136 = vadd.xlane.f32.xlu0 %v135_v1  ;;  %s342_s29 = sshra.s32 %s168_s28, 4  ;;  %s348_s4 = scalar_lea.hbm %s534_s1, 16  ;;  %s343_s29 = int_to_ptr.hbm [resolvable:$true] %s342_s29 }
  0x2c   : > { %s344_s30 = scalar_lea.hbm %s343_s29, 8  ;;  %p349_p0 = scmp.lt.s32.totalorder %s343_s29, %s534_s1 }
  0x2d   : > { %p345_p6 = scmp.ne.s32.totalorder %s343_s29, %s344_s30  ;;  %p350_p1 = scmp.lt.s32.totalorder %s348_s4, %s344_s30 }
  0x2f   : > { %p346_p9 = pnand %p345_p6, %p456_p11  ;;  %p351_p3 = por %p350_p1, %p349_p0 }
  0x31   : > { %p347_p13 = pneg %p346_p9 }
  0x33   : > { %p352_p4 = pnand %p351_p3, %p347_p13 }
  0x9e   : > { %v137_v2 = vpop.xlane.xlu0 %136 }
  0x9f   : > { %296 = vrsqrt.f32 %v137_v2  ;;  %vm145_vm1 = vweird.f32 %v137_v2  ;;  %vm138_vm3 = vcmp.gt.f32.partialorder %v137_v2, 1.0 }
  0xa5   : > { %v297_v3 = vpop.eup %296 }
  0xa6   : > { %v140_v4 = vmul.f32 %v297_v3, %v137_v2  ;;  %vm146_vm0 = vweird.f32 %v297_v3 }
  0xa7   : > { %vm147_vm2 = vmor %vm145_vm1, %vm146_vm0 }
  0xa8   : > { %v141_v5 = vmul.f32 %v297_v3, %v140_v4 }
  0xaa   : > { %v142_v6 = vmul.f32 0.5, %v141_v5 }
  0xac   : > { %v143_v7 = vsub.f32 1.5, %v142_v6 }
  0xae   : > { %v144_v8 = vmul.f32 %v297_v3, %v143_v7 }
  0xb0   : > { %v148_v9 = vsel %vm147_vm2, %v297_v3, %v144_v8 }
  0xb1   : > { %v149_v10 = vsel %vm138_vm3, %v148_v9, 1.0 }
  0xb2   : > { %v150_v11 = vmul.f32 %v149_v10, %v134_v0 }
  0xb4   : > { %151 = vst [vmem:[%s133_s17] sm:$0xff] %v150_v11 }
  0xb5   : > { %355 = shalt.err (!%p352_p4)
}
  0xb6   : > { %252 = dma.vmem_to_hbm [thread:$0]  (%p456_p11), %s166_s27, 128, %s168_s28, %s153_s10  }
  0xb7 PF: > { %s179_s13 = sand.u32 1, %s382_s6   ;;  %p540_p7 = scmp.ge.s32.totalorder %s394_s9, 2 }
  0xb8   : > { %s180_s14 = scalar_lea.sflag [#allocation4], %s179_s13 }
  0xb9   : > { %p259_p5 = pnand %p540_p7, %p460_p12 }
  0xbb   : > { %p260_p8 = pneg %p259_p5 }
  0xbd   : > { %377 = dma.done.wait (%p260_p8), %s180_s14, 128  }
  0xbe   : > { %379 = vsyncadd (%p260_p8), %s180_s14, 4294967168  ;;  %p14_p10 = scmp.ge.s32.totalorder %s431_s12, 4   ;;  %s541_s6 = smov %s386_s7 }
  0xbf   : > { %s542_s7 = smov %s390_s8  ;;  %s543_s8 = smov %s443_s15 }
  0xc0   : > { %s544_s9 = smov %s431_s12  ;;  %16 = sbr.rel (!%p14_p10) target bundleno = 5 (0x5), region = 69 }
  0xc5   :  { %186 = vsyncpa [#allocation3], 1 }
  0xc6   :  { %188 = vsyncpa [#allocation3 + $0x1], 1 }
  0xc7   :  { %189 = vsyncpa [#allocation4], 1 }
  0xc8   :  { %191 = vsyncpa [#allocation4 + $0x1], 1 }

</bundles_post_ra>
